<compile_context>
chip_gen: v7x
topology: tpu7x:2x2x1
jax: 0.10.0
libtpu: 0.0.40
codegen_flags: <defaults>
</compile_context>

<pallas_src>
import jax
import jax.numpy as jnp
from jax.experimental import pallas as pl
from jax.experimental.pallas import tpu as pltpu


def _round_up(x, m):
    return ((x + m - 1) // m) * m


def _mlp_head_kernel(x_ref, w1_ref, b1_ref, w2_ref, b2_ref, o_ref):
    """Fused 2-layer MLP on one row tile: relu(x @ W1 + b1) @ W2 + b2."""
    w1 = w1_ref[...]
    x = x_ref[...].astype(w1.dtype)                    # no-op for f32; in-VMEM cast for bf16 weights
    h = jnp.dot(x, w1, preferred_element_type=jnp.float32)          # MXU
    h = h + b1_ref[...].astype(jnp.float32)                         # bias broadcasts (1, dhid)
    h = jnp.maximum(h, 0.0)                                         # ReLU on VPU (free slot)
    w2 = w2_ref[...]
    y = jnp.dot(h.astype(w2.dtype), w2, preferred_element_type=jnp.float32)  # MXU
    y = y + b2_ref[...].astype(jnp.float32)
    o_ref[...] = y.astype(o_ref.dtype)


def gnn_node_head_mlp(x, w1, b1, w2, b2, *, tm=None):
    """Row-wise post-MP MLP: relu(x @ W1 + b1) @ W2 + b2 as one fused Pallas kernel.

    x:  [M, dim_in]
    w1: [dim_in, dim_hid]   b1: [1, dim_hid]
    w2: [dim_hid, dim_out]  b2: [1, dim_out]   (weights may be bf16)
    Returns [M, dim_out] in x.dtype.  No padding or post-slicing is performed:
    feature dims ride on the full-array-dim exemption of the (8,128) rule and
    the row axis uses a ragged cdiv grid.
    """
    M, dim_in = x.shape
    dim_hid = w1.shape[1]
    dim_out = w2.shape[1]
    assert w1.shape[0] == dim_in and w2.shape[0] == dim_hid
    assert b1.shape == (1, dim_hid) and b2.shape == (1, dim_out)

    # Row tile: big enough to amortize the ~0.35us/step overhead, but chosen so
    # the grid has >= 4 steps, letting dimension_semantics=("parallel",) shard
    # across v7x's 2 TensorCores (neutral on single-TC v5e/v6e).
    if tm is None:
        tm = min(512, max(8, _round_up(-(-max(M, 1) // 4), 8)))
    else:
        tm = max(8, _round_up(int(tm), 8))
    grid = (pl.cdiv(M, tm),)   # ragged last tile: OOB reads unused, OOB writes masked

    def _isize(a):
        return jnp.dtype(a.dtype).itemsize

    weight_bytes = (w1.size * _isize(w1) + b1.size * _isize(b1)
                    + w2.size * _isize(w2) + b2.size * _isize(b2))
    # Weights/biases are grid-invariant: single-buffer them when they are large
    # enough that the wasted second VMEM copy matters (essential on v7x 64 MiB).
    single_buffer_weights = weight_bytes > (4 << 20)

    def _resident(shape):
        if single_buffer_weights:
            return pl.BlockSpec(shape, lambda i: (0, 0), pipeline_mode=pl.Buffered(1))
        return pl.BlockSpec(shape, lambda i: (0, 0))

    # --- VMEM budget: x/out tiles double-buffered, f32 intermediates, weights. ---
    w_copies = 1 if single_buffer_weights else 2
    vmem_needed = (2 * tm * dim_in * _isize(x)
                   + 2 * tm * dim_out * _isize(x)
                   + tm * dim_hid * 4            # h = relu(x @ W1 + b1), f32 in VMEM
                   + tm * dim_out * 4            # f32 accumulator of the second dot
                   + w_copies * weight_bytes)
    vmem_limit = None
    if vmem_needed > (16 << 20):                 # below this, every generation's default is fine
        try:
            info = pltpu.get_tpu_info()
            cap = int(getattr(info, "vmem_capacity_bytes", 64 << 20))
        except Exception:
            cap = 64 << 20                       # conservative: v7x per-TC physical VMEM
        # Never go below the 32 MiB v6e/v7x scoped default; leave ~15% headroom
        # for Mosaic internal scratch (never request 100% of physical VMEM).
        vmem_limit = max(int(vmem_needed * 1.25) + (2 << 20), 32 << 20)
        vmem_limit = min(vmem_limit, int(cap * 0.85))

    flops = 2 * M * (dim_in * dim_hid + dim_hid * dim_out)
    bytes_accessed = (M * dim_in * _isize(x) + M * dim_out * _isize(x) + weight_bytes)
    cost = pl.CostEstimate(flops=flops, transcendentals=0,
                           bytes_accessed=bytes_accessed)

    return pl.pallas_call(
        _mlp_head_kernel,
        out_shape=jax.ShapeDtypeStruct((M, dim_out), x.dtype),
        grid_spec=pltpu.PrefetchScalarGridSpec(
            num_scalar_prefetch=0,
            grid=grid,
            in_specs=[
                pl.BlockSpec((tm, dim_in), lambda i: (i, 0)),   # x row tile
                _resident((dim_in, dim_hid)),                   # W1 (grid-invariant)
                _resident((1, dim_hid)),                        # b1
                _resident((dim_hid, dim_out)),                  # W2
                _resident((1, dim_out)),                        # b2
            ],
            out_specs=pl.BlockSpec((tm, dim_out), lambda i: (i, 0)),
        ),
        compiler_params=pltpu.CompilerParams(
            dimension_semantics=("parallel",),
            vmem_limit_bytes=vmem_limit),
        cost_estimate=cost,
    )(x, w1, b1, w2, b2)


def gnn_node_head_forward(node_feature, node_label, node_label_index,
                          w1, b1, w2, b2):
    """Full GNNNodeHead.forward: post-MP MLP + _apply_index.

    The MLP is row-wise, so the labeled rows are gathered FIRST and the kernel
    runs only over [L, dim_in] — identical to MLP-then-gather, but skips all
    HBM traffic / MXU work for unlabeled nodes.
    """
    # TODO(synk): the row gather stays as plain-JAX glue; for very large L it
    # could be fused into the kernel via num_scalar_prefetch=1 + per-row DMA.
    gathered = node_feature[node_label_index]                 # [L, dim_in]
    pred = gnn_node_head_mlp(gathered, w1, b1, w2, b2)        # [L, dim_out]
    # Mirrors GraphGym's _apply_index exactly: label is returned ungathered
    # when the index length equals the label length.
    if node_label_index.shape[0] == node_label.shape[0]:
        label = node_label
    else:
        label = node_label[node_label_index]
    return pred, label


if __name__ == "__main__":
    # Small deterministic example consistent with the module.
    N = 64          # number of nodes
    dim_in = 32     # GNN hidden dim feeding the head
    dim_out = 8     # number of node classes
    L = 13          # number of labeled nodes; not a multiple of 8 -> exercises ragged tile

    key = jax.random.PRNGKey(0)
    k_x, k_w1, k_b1, k_w2, k_b2, k_idx, k_lbl = jax.random.split(key, 7)

    node_feature = jax.random.normal(k_x, (N, dim_in), dtype=jnp.float32)

    # Deterministic parameter init (Kaiming-uniform-ish scaling), [in, out] layout.
    lim1 = 1.0 / jnp.sqrt(dim_in)
    w1 = jax.random.uniform(k_w1, (dim_in, dim_in), jnp.float32, -lim1, lim1)
    b1 = jax.random.uniform(k_b1, (1, dim_in), jnp.float32, -lim1, lim1)
    lim2 = 1.0 / jnp.sqrt(dim_in)
    w2 = jax.random.uniform(k_w2, (dim_in, dim_out), jnp.float32, -lim2, lim2)
    b2 = jax.random.uniform(k_b2, (1, dim_out), jnp.float32, -lim2, lim2)

    # Labels per node; index a subset (shapes differ -> second _apply_index branch).
    node_label = jax.random.randint(k_lbl, (N,), 0, dim_out, dtype=jnp.int32)
    node_label_index = jax.random.permutation(k_idx, N)[:L].astype(jnp.int32)

    pred, label = gnn_node_head_forward(
        node_feature, node_label, node_label_index, w1, b1, w2, b2)
    jax.block_until_ready((pred, label))

    # Reference check against plain JAX (MLP over all nodes, then gather).
    ref_all = jnp.maximum(node_feature @ w1 + b1, 0.0) @ w2 + b2
    ref_pred = ref_all[node_label_index]
    ref_label = node_label[node_label_index]
    assert pred.shape == (L, dim_out) and label.shape == (L,)
    assert jnp.allclose(pred, ref_pred, atol=1e-5, rtol=1e-5)
    assert jnp.array_equal(label, ref_label)

    # First _apply_index branch (index length == label length): label ungathered.
    full_idx = jnp.arange(N, dtype=jnp.int32)
    pred2, label2 = gnn_node_head_forward(
        node_feature, node_label, full_idx, w1, b1, w2, b2)
    jax.block_until_ready((pred2, label2))
    assert jnp.allclose(pred2, ref_all, atol=1e-5, rtol=1e-5)
    assert jnp.array_equal(label2, node_label)

    # bf16-weight path (MXU-native on v6e/v7x): weights stored bf16 once by the
    # caller, biases/ReLU stay f32, x is cast to bf16 inside VMEM, f32 accumulation.
    pred3, _ = gnn_node_head_forward(
        node_feature, node_label, node_label_index,
        w1.astype(jnp.bfloat16), b1, w2.astype(jnp.bfloat16), b2)
    jax.block_until_ready(pred3)
    assert jnp.allclose(pred3, ref_pred, atol=5e-2, rtol=5e-2)

    print("KERNEL_OK")
</pallas_src>

<mosaic_0001>
module attributes {stable_mosaic.version = 11 : i64} {
  func.func @_mlp_head_kernel(%arg0: i32, %arg1: memref<8x32xf32, #tpu.memory_space<vmem>>, %arg2: memref<32x32xf32, #tpu.memory_space<vmem>>, %arg3: memref<1x32xf32, #tpu.memory_space<vmem>>, %arg4: memref<32x8xf32, #tpu.memory_space<vmem>>, %arg5: memref<1x8xf32, #tpu.memory_space<vmem>>, %arg6: memref<8x8xf32, #tpu.memory_space<vmem>>) attributes {dimension_semantics = [#tpu.dimension_semantics<parallel>], iteration_bounds = array<i64: 2>, scalar_prefetch = 0 : i64, scratch_operands = 0 : i64, tpu.core_type = #tpu.core_type<tc>, window_params = [{transform_indices = @transform_0, window_bounds = array<i64: 8, 32>}, {pipeline_mode = #tpu.pipeline_mode<synchronous>, transform_indices = @transform_1, window_bounds = array<i64: 32, 32>}, {pipeline_mode = #tpu.pipeline_mode<synchronous>, transform_indices = @transform_2, window_bounds = array<i64: 1, 32>}, {pipeline_mode = #tpu.pipeline_mode<synchronous>, transform_indices = @transform_3, window_bounds = array<i64: 32, 8>}, {pipeline_mode = #tpu.pipeline_mode<synchronous>, transform_indices = @transform_4, window_bounds = array<i64: 1, 8>}, {transform_indices = @transform_5, window_bounds = array<i64: 8, 8>}]} {
    %c0 = arith.constant 0 : index
    %c0_0 = arith.constant 0 : index
    %0 = vector.load %arg2[%c0, %c0_0] : memref<32x32xf32, #tpu.memory_space<vmem>>, vector<32x32xf32>
    %c0_1 = arith.constant 0 : index
    %c0_2 = arith.constant 0 : index
    %1 = vector.load %arg1[%c0_1, %c0_2] : memref<8x32xf32, #tpu.memory_space<vmem>>, vector<8x32xf32>
    %cst = arith.constant dense<0.000000e+00> : vector<8x32xf32>
    %2 = tpu.matmul %1, %0, %cst {dimension_numbers = #tpu.dot_dimension_numbers<[1], [0], [0], [1], [0, 0, 1, 1], [], []>} : vector<8x32xf32>, vector<32x32xf32>, vector<8x32xf32> -> vector<8x32xf32>
    %c0_3 = arith.constant 0 : index
    %c0_4 = arith.constant 0 : index
    %3 = vector.load %arg3[%c0_3, %c0_4] : memref<1x32xf32, #tpu.memory_space<vmem>>, vector<1x32xf32>
    %4 = vector.broadcast %3 : vector<1x32xf32> to vector<8x32xf32>
    %5 = arith.addf %2, %4 : vector<8x32xf32>
    %cst_5 = arith.constant 0.000000e+00 : f32
    %6 = vector.broadcast %cst_5 : f32 to vector<8x32xf32>
    %7 = arith.maximumf %5, %6 : vector<8x32xf32>
    %c0_6 = arith.constant 0 : index
    %c0_7 = arith.constant 0 : index
    %8 = vector.load %arg4[%c0_6, %c0_7] : memref<32x8xf32, #tpu.memory_space<vmem>>, vector<32x8xf32>
    %cst_8 = arith.constant dense<0.000000e+00> : vector<8x8xf32>
    %9 = tpu.matmul %7, %8, %cst_8 {dimension_numbers = #tpu.dot_dimension_numbers<[1], [0], [0], [1], [0, 0, 1, 1], [], []>} : vector<8x32xf32>, vector<32x8xf32>, vector<8x8xf32> -> vector<8x8xf32>
    %c0_9 = arith.constant 0 : index
    %c0_10 = arith.constant 0 : index
    %10 = vector.load %arg5[%c0_9, %c0_10] : memref<1x8xf32, #tpu.memory_space<vmem>>, vector<1x8xf32>
    %11 = vector.broadcast %10 : vector<1x8xf32> to vector<8x8xf32>
    %12 = arith.addf %9, %11 : vector<8x8xf32>
    %c0_11 = arith.constant 0 : index
    %c0_12 = arith.constant 0 : index
    %13 = vector.load %arg6[%c0_11, %c0_12] : memref<8x8xf32, #tpu.memory_space<vmem>>, vector<8x8xf32>
    tpu.vector_store %arg6[%c0_11, %c0_12], %12 {strides = array<i32>} : memref<8x8xf32, #tpu.memory_space<vmem>>, vector<8x8xf32>,
    return
  }
  func.func @transform_0(%arg0: i32) -> (i32, i32) {
    %c0_i32 = arith.constant 0 : i32
    %c0_i32_0 = arith.constant 0 : i32
    return %arg0, %c0_i32 : i32, i32
  }
  func.func @transform_1(%arg0: i32) -> (i32, i32) {
    %c0_i32 = arith.constant 0 : i32
    %c0_i32_0 = arith.constant 0 : i32
    %c0_i32_1 = arith.constant 0 : i32
    return %c0_i32, %c0_i32_0 : i32, i32
  }
  func.func @transform_2(%arg0: i32) -> (i32, i32) {
    %c0_i32 = arith.constant 0 : i32
    %c0_i32_0 = arith.constant 0 : i32
    %c0_i32_1 = arith.constant 0 : i32
    return %c0_i32, %c0_i32_0 : i32, i32
  }
  func.func @transform_3(%arg0: i32) -> (i32, i32) {
    %c0_i32 = arith.constant 0 : i32
    %c0_i32_0 = arith.constant 0 : i32
    %c0_i32_1 = arith.constant 0 : i32
    return %c0_i32, %c0_i32_0 : i32, i32
  }
  func.func @transform_4(%arg0: i32) -> (i32, i32) {
    %c0_i32 = arith.constant 0 : i32
    %c0_i32_0 = arith.constant 0 : i32
    %c0_i32_1 = arith.constant 0 : i32
    return %c0_i32, %c0_i32_0 : i32, i32
  }
  func.func @transform_5(%arg0: i32) -> (i32, i32) {
    %c0_i32 = arith.constant 0 : i32
    %c0_i32_0 = arith.constant 0 : i32
    return %arg0, %c0_i32 : i32, i32
  }
}

</mosaic_0001>

<bundles_post_ra>
// kernel: tpu_custom_call.1
= control target key start
LH: loop header
LB: loop body
LE: loop exit
PB: predicated region body
PF: predicated region fallthrough
CT: control target
= control target key end

     0   :  { %10 = vsyncpa [#allocation3], 0  ;;  %s815_s0 = inlined_call_operand.hbm [shape: f32[13,32], index: 0, kind: input, shape index: {}]   ;;  %s816_s1 = inlined_call_operand.vmem [shape: f32[32,32], index: 1, kind: input, shape index: {}]   ;;  %s817_s2 = inlined_call_operand.vmem [shape: f32[1,32], index: 2, kind: input, shape index: {}]   ;;  %s818_s3 = inlined_call_operand.vmem [shape: f32[32,8], index: 3, kind: input, shape index: {}]   ;;  %s819_s4 = inlined_call_operand.vmem [shape: f32[1,8], index: 4, kind: input, shape index: {}]   ;;  %s820_s5 = inlined_call_operand.vmem [shape: f32[13,8], index: 5, kind: output, shape index: {}]  }
   0x1   :  { %12 = vsyncpa [#allocation3 + $0x1], 0  ;;  %s678_s18 = smov 0   ;;  %s680_s19 = smov 0  }
   0x2   :  { %s682_s20 = smov 0   ;;  %s684_s21 = smov 0  }
   0x3 LB: > { %s697_s22 = sadd.s32 4294967295, %s642_s21   ;;  %s700_s23 = sadd.s32 1, %s642_s21   ;;  %s642_s21 = sphi %s684_s21, %s828_s21   ;;  %s638_s20 = sphi %s682_s20, %s827_s20   ;;  %s634_s19 = sphi %s680_s19, %s826_s19   ;;  %s630_s18 = sphi %s678_s18, %s825_s18  }
   0x4   : > { %s22_s24 = ssub.s32 %s642_s21, %s700_s23  ;;  %s25_s25 = sadd.s32 1, %s638_s20 }
   0x5   : > { %p23_p0 = scmp.eq.s32.totalorder %s22_s24, 0  ;;  %p32_p1 = scmp.ne.s32.totalorder %s638_s20, %s634_s19 }
   0x6   : > { %p33_p2 = scmp.eq.s32.totalorder %s642_s21, 0  ;;  %p38_p3 = scmp.ne.s32.totalorder %s634_s19, %s630_s18 }
   0x7   : > { %s710_s26 = scalar_select %p23_p0, %s638_s20, %s25_s25  }
   0x8   : > { %p34_p4 = por %p33_p2, %p32_p1  ;;  %p39_p5 = scmp.eq.s32.totalorder %s697_s22, 0 }
   0x9   : > { %p542_p6 = scmp.lt.s32.totalorder %s642_s21, 2  ;;  %s184_s28 = sand.u32 1, %s638_s20  }
   0xa   : > { %p714_p7 = por %p39_p5, %p38_p3  ;;  %s481_s29 = sshll.u32 %s184_s28, 3 }
   0xb   : > { %s482_s30 = sshll.u32 %s642_s21, 7  ;;  %s188_s9 = scalar_lea.vmem [#allocation2], %s481_s29 }
   0xc   : > { %s723_s8 = scalar_lea.hbm %s815_s0, %s482_s30  ;;  %s195_s10 = sshll.u32 %s188_s9, 4  ;;  %s725_s10 = int_to_ptr.vmem [resolvable:$true] %s195_s10 }
   0xd   : > { %p727_p8 = pnand %p542_p6, %p34_p4  ;;  %s185_s12 = scalar_lea.sflag [#allocation3], %s184_s28 }
   0xe   : > { %s578_s13 = scalar_lea.hbm %s723_s8, 128  ;;  %s583_s16 = scalar_lea.hbm %s815_s0, 256 }
   0xf   : > { %p579_p11 = scmp.ne.s32.totalorder %s723_s8, %s578_s13  ;;  %p580_p12 = pneg %p727_p8 }
  0x10   : > { %p584_p1 = scmp.lt.u32.totalorder %s723_s8, %s815_s0  ;;  %p585_p2 = scmp.lt.u32.totalorder %s583_s16, %s578_s13 }
  0x11   : > { %p581_p13 = pnand %p580_p12, %p579_p11  ;;  %p587_p4 = scmp.lt.u32.totalorder %s578_s13, %s723_s8 }
  0x12   : > { %p586_p3 = por %p585_p2, %p584_p1 }
  0x13   : > { %p582_p0 = pneg %p581_p13 }
  0x14   : > { %p588_p5 = por %p587_p4, %p586_p3 }
  0x16   : > { %p589_p6 = pnand %p588_p5, %p582_p0 }
  0x18   : > { %592 = shalt.err (!%p589_p6)
}
  0x19   : > { %s593_s24 = scalar_lea.vmem %s725_s10, 128  ;;  %s644_s25 = smov [#allocation2]  }
  0x1a   : > { %p594_p11 = scmp.ne.s32.totalorder %s725_s10, %s593_s24  ;;  %s598_s28 = sshll.u32 %s644_s25, 4  ;;  %s599_s28 = int_to_ptr.vmem [resolvable:$false] %s598_s28 }
  0x1b   : > { %s600_s29 = scalar_lea.vmem %s599_s28, 256  ;;  %p601_p10 = scmp.lt.s32.totalorder %s725_s10, %s599_s28 }
  0x1c   : > { %p596_p13 = pnand %p594_p11, %p580_p12  ;;  %p602_p1 = scmp.lt.s32.totalorder %s600_s29, %s593_s24 }
  0x1e   : > { %p597_p9 = pneg %p596_p13  ;;  %p603_p2 = por %p602_p1, %p601_p10 }
  0x20   : > { %p604_p3 = pnand %p603_p2, %p597_p9 }
  0x22   : > { %607 = shalt.err (!%p604_p3)
}
  0x23   : > { %541 = dma.hbm_to_vmem [thread:$0]  (!%p727_p8), %s723_s8, 128, %s725_s10, %s185_s12  }
  0x24   : > { %p823_p0 = scmp.lt.s32.totalorder %s642_s21, 3  ;;  %p824_p4 = scmp.ge.s32.totalorder %s642_s21, 1 }
  0x26   : > { %p201_p12 = pnand %p824_p4, %p823_p0 }
  0x27   : > { %s206_s30 = sand.u32 (!%p201_p12), 1, %s634_s19  }
  0x28   : > { %204 = sbr.rel (%p201_p12) target bundleno = 489 (0x1e9), region = 40  ;;  %s484_s6 = sshll.u32 (!%p201_p12), %s206_s30, 3 }
  0x29   : > { %s207_s7 = scalar_lea.sflag (!%p201_p12), [#allocation3], %s206_s30  ;;  %s210_s9 = scalar_lea.vmem (!%p201_p12), [#allocation2], %s484_s6 }
  0x2f   : > { %625 = dma.done.wait (%p714_p7), %s207_s7, 128  }
  0x30   : > { %627 = vsyncadd (%p714_p7), %s207_s7, 4294967168  ;;  %v645_v0 = vmov 0.0|0.0   ;;  %vm646_vm0 = vmmov 0   ;;  %v647_v1 = vmov 0.0   ;;  %v240_v2 = vld [vmem:[%s816_s1] sm:$0xff]  ;;  %v241_v3 = vld [vmem:[%s816_s1 + $0x8] sm:$0xff] }
  0x31   : > { %524 = vmatprep.subr.bf16.mxu0 %v645_v0  ;;  %510 = vmatprep.mubr.msk.f32.mxu0 %vm646_vm0, %v647_v1  ;;  %v242_v4 = vld [vmem:[%s816_s1 + $0x10] sm:$0xff]  ;;  %v525_v5 = vpack.c.bf16 %v241_v3, %v240_v2  ;;  %v243_v6 = vld [vmem:[%s816_s1 + $0x18] sm:$0xff]  ;;  %v327_v7 = vld [vmem:[%s818_s3] sm:$0xff]  ;;  %vm252_vm1 = vcmask 261120   ;;  %p236_p7 = scmp.lt.s32.totalorder %s697_s22, 1  ;;  %vm411_vm2 = vcmask 64512  }
  0x32   : > { %530 = vmatprep.subr.bf16.mxu1 %v645_v0  ;;  %521 = vmatprep.mubr.msk.f32.mxu1 %vm646_vm0, %v647_v1  ;;  %v328_v8 = vld [vmem:[%s818_s3 + $0x8] sm:$0xff]  ;;  %v528_v9 = vpack.c.bf16 %v243_v6, %v242_v4  ;;  %v329_v12 = vld [vmem:[%s818_s3 + $0x10] sm:$0xff]  ;;  %v330_v13 = vld [vmem:[%s818_s3 + $0x18] sm:$0xff] }
  0x33   : > { %526 = vmatpush3.bf16.msra.mxu0 %v525_v5  ;;  %v531_v10 = vpack.c.bf16 %v328_v8, %v327_v7  ;;  %v244_v11 = vld [vmem:[%s210_s9] sm:$0xff]  ;;  %v534_v14 = vpack.c.bf16 %v330_v13, %v329_v12  ;;  %s830_s22 = smov (!%p236_p7, %s697_s22), 1 }
  0x34   : > { %527 = vmatprep.subr.bf16.mxu0 %v645_v0  ;;  %v486_v15 = vld [vmem:[%s817_s2] ss:$0 sm:$0xff]  ;;  %s485_s7 = sshll.u32 %s830_s22, 3 }
  0x35   : > { %532 = vmatpush3.bf16.msra.mxu1 %v531_v10  ;;  %v488_v20 = vld [vmem:[%s819_s4] ss:$0 sm:$0xff]  ;;  %s239_s11 = scalar_lea.vmem %s820_s5, %s485_s7 }
  0x36   : > { %533 = vmatprep.subr.bf16.mxu1 %v645_v0 }
  0x37   : > { %529 = vmatpush3.bf16.msra.mxu0 %v528_v9 }
  0x39   : > { %535 = vmatpush3.bf16.msra.mxu1 %v534_v14 }
  0x3a   : > { %511 = vmatmul.mubr.msk.f32.vlgmr.msra.gmra.mrb[0].mxu0 %vm252_vm1, %v244_v11 }
 0x10d   : > { %v322_v16 = vpop.f32.mrb[0].mxu0 }
 0x10e   : > { %v323_v17 = vadd.f32 %v486_v15, %v322_v16  ;;  %v512_v18 = vpop.f32.mrb[1].mxu0 }
 0x110   : > { %v326_v19 = vmax.f32 %v323_v17, 0.0 }
 0x112   : > { %522 = vmatmul.mubr.msk.f32.vlgmr.msra.gmra.mrb[0].mxu1 %vm252_vm1, %v326_v19 }
 0x1e5   : > { %v407_v21 = vpop.f32.mrb[0].mxu1 }
 0x1e6   : > { %v408_v22 = vadd.f32 %v488_v20, %v407_v21  ;;  %v523_v23 = vpop.f32.mrb[1].mxu1 }
 0x1e8   : > { %412 = vst.msk [vmem:[%s239_s11] sm:$0xff] %vm411_vm2, %v408_v22 }
 0x1e9 PF: > { %p15_p8 = scmp.ge.s32.totalorder %s700_s23, 4   ;;  %s825_s18 = smov %s634_s19 }
 0x1ea   : > { %s826_s19 = smov %s638_s20  ;;  %s827_s20 = smov %s710_s26 }
 0x1eb   : > { %s828_s21 = smov %s700_s23  ;;  %17 = sbr.rel (!%p15_p8) target bundleno = 3 (0x3), region = 80 }
 0x1f2   :  { %432 = vsyncpa [#allocation3], 1 }
 0x1f3   :  { %434 = vsyncpa [#allocation3 + $0x1], 1 }

</bundles_post_ra>
